<compile_context>
chip_gen: v6e
topology: v6e:2x2x1
jax: 0.10.0
libtpu: 0.0.40
codegen_flags: <defaults>
</compile_context>

<pallas_src>
import jax
import jax.numpy as jnp
from jax.experimental import pallas as pl
from jax.experimental.pallas import tpu as pltpu

# Matches the module's InstanceNorm(epsilon=1e-08). Note: torch.nn.InstanceNorm2d
# defaults to 1e-5, but ApplyStyle uses its own InstanceNorm with 1e-8.
EPS = 1e-8


def _apply_style_kernel(gain_ref, shift_ref, x_ref, o_ref):
    # gain_ref  : (Rb, 1)   per-row gain  = style_scale + 1   (row = one (n, c) pair)
    # shift_ref : (Rb, 1)   per-row shift = style_shift
    # x_ref     : (Rb, HW)  spatial on the lane axis
    # o_ref     : (Rb, HW)
    x = x_ref[...].astype(jnp.float32)
    mean = jnp.mean(x, axis=-1, keepdims=True)                    # (Rb, 1)
    xc = x - mean
    var = jnp.mean(xc * xc, axis=-1, keepdims=True)               # (Rb, 1)
    a = gain_ref[...].astype(jnp.float32) * jax.lax.rsqrt(var + EPS)
    b = shift_ref[...].astype(jnp.float32) - mean * a
    o_ref[...] = (x * a + b).astype(o_ref.dtype)                  # single fused pass


def _choose_row_tile(R, HW, itemsize, budget_bytes=8 << 20):
    """Pick rows per grid step. Tile must equal R or be a multiple of 8 (sublanes)."""
    def step_bytes(rb):
        # double-buffered input + output blocks held per grid step
        return 4 * rb * HW * itemsize

    cands = [rb for rb in range(8, R + 1, 8) if R % rb == 0]
    if R not in cands:
        cands.append(R)
    fitting = [rb for rb in cands if step_bytes(rb) <= budget_bytes]
    if not fitting:
        return 8  # minimum legal sublane tile; caller pads R up to a multiple of it
    # Prefer >=2 grid steps (two v7x TensorCores) while each step still moves >=1 MiB
    # so the ~0.35us/step fixed overhead stays amortized.
    split = [rb for rb in fitting if rb < R and step_bytes(rb) >= (1 << 20)]
    return max(split) if split else max(fitting)


def apply_style(x_nchw, latent, weight, bias):
    """
    x_nchw : (N, C, H, W) float32
    latent : (N, L)       float32
    weight : (2C, L)      float32  (PyTorch nn.Linear weight layout)
    bias   : (2C,)        float32
    returns (N, C, H, W) float32
    """
    N, C, H, W = x_nchw.shape
    HW = H * W
    R = N * C

    # --- style linear hoisted out of the kernel (runs once, plain XLA matmul) ---
    style = latent @ weight.T + bias                      # (N, 2C)
    gain = (style[:, :C] + 1.0).reshape(R, 1)             # per-(n, c) scale + 1
    shift = style[:, C:].reshape(R, 1)                    # per-(n, c) shift

    # --- free, contiguous relayout: rows = (n, c), lanes = spatial ---
    x2 = x_nchw.reshape(R, HW)

    rb = _choose_row_tile(R, HW, x2.dtype.itemsize)
    r_pad = pl.cdiv(R, rb) * rb
    if r_pad != R:
        pad = r_pad - R
        x2 = jnp.pad(x2, ((0, pad), (0, 0)))
        gain = jnp.pad(gain, ((0, pad), (0, 0)))
        shift = jnp.pad(shift, ((0, pad), (0, 0)))

    out = pl.pallas_call(
        _apply_style_kernel,
        out_shape=jax.ShapeDtypeStruct((r_pad, HW), x2.dtype),
        grid=(r_pad // rb,),
        in_specs=[
            pl.BlockSpec((rb, 1), lambda i: (i, 0)),      # gain
            pl.BlockSpec((rb, 1), lambda i: (i, 0)),      # shift
            pl.BlockSpec((rb, HW), lambda i: (i, 0)),     # x rows
        ],
        out_specs=pl.BlockSpec((rb, HW), lambda i: (i, 0)),
        compiler_params=pltpu.CompilerParams(
            dimension_semantics=("parallel",),
            vmem_limit_bytes=32 * 1024 * 1024,
        ),
    )(gain, shift, x2)

    if r_pad != R:
        out = out[:R]
    return out.reshape(N, C, H, W)


def apply_style_reference(x_nchw, latent, weight, bias):
    """Pure-JAX reference matching the PyTorch ApplyStyle forward."""
    mean = jnp.mean(x_nchw, axis=(2, 3), keepdims=True)
    xc = x_nchw - mean
    var = jnp.mean(xc * xc, axis=(2, 3), keepdims=True)
    xn = xc * jax.lax.rsqrt(var + EPS)

    style = latent @ weight.T + bias                      # (N, 2C)
    C = x_nchw.shape[1]
    style = style.reshape(-1, 2, C, 1, 1)
    return xn * (style[:, 0] * 1 + 1.0) + style[:, 1] * 1


if __name__ == "__main__":
    # Small shapes consistent with the module: batch=2, channels=4, spatial=16,
    # latent_size=32.
    N, C, H, W = 2, 4, 16, 16
    L = 32

    key = jax.random.PRNGKey(0)
    kx, kl, kw, kb = jax.random.split(key, 4)

    x = jax.random.normal(kx, (N, C, H, W), dtype=jnp.float32)
    latent = jax.random.normal(kl, (N, L), dtype=jnp.float32)

    # Deterministic nn.Linear-style init: U(-1/sqrt(L), 1/sqrt(L))
    bound = 1.0 / (L ** 0.5)
    weight = jax.random.uniform(kw, (2 * C, L), minval=-bound, maxval=bound,
                                dtype=jnp.float32)
    bias = jax.random.uniform(kb, (2 * C,), minval=-bound, maxval=bound,
                              dtype=jnp.float32)

    apply_style_jit = jax.jit(apply_style)
    out = apply_style_jit(x, latent, weight, bias)
    out = jax.block_until_ready(out)

    ref = apply_style_reference(x, latent, weight, bias)
    assert out.shape == (N, C, H, W)
    assert jnp.allclose(out, ref, atol=1e-5, rtol=1e-5), (
        f"max abs err = {jnp.max(jnp.abs(out - ref))}")

    print("KERNEL_OK")
</pallas_src>

<mosaic_0001>
module attributes {stable_mosaic.version = 11 : i64} {
  func.func @_apply_style_kernel(%arg0: i32, %arg1: memref<8x1xf32, #tpu.memory_space<vmem>>, %arg2: memref<8x1xf32, #tpu.memory_space<vmem>>, %arg3: memref<8x256xf32, #tpu.memory_space<vmem>>, %arg4: memref<8x256xf32, #tpu.memory_space<vmem>>) attributes {dimension_semantics = [#tpu.dimension_semantics<parallel>], iteration_bounds = array<i64: 1>, scalar_prefetch = 0 : i64, scratch_operands = 0 : i64, tpu.core_type = #tpu.core_type<tc>, window_params = [{transform_indices = @transform_0, window_bounds = array<i64: 8, 1>}, {transform_indices = @transform_1, window_bounds = array<i64: 8, 1>}, {transform_indices = @transform_2, window_bounds = array<i64: 8, 256>}, {transform_indices = @transform_3, window_bounds = array<i64: 8, 256>}]} {
    %c0 = arith.constant 0 : index
    %c0_0 = arith.constant 0 : index
    %0 = vector.load %arg3[%c0, %c0_0] : memref<8x256xf32, #tpu.memory_space<vmem>>, vector<8x256xf32>
    %cst = arith.constant dense<0.000000e+00> : vector<8xf32>
    %1 = vector.multi_reduction <add>, %0, %cst [1] : vector<8x256xf32> to vector<8xf32>
    %2 = vector.shape_cast %1 : vector<8xf32> to vector<8x1xf32>
    %cst_1 = arith.constant 2.560000e+02 : f32
    %3 = vector.broadcast %cst_1 : f32 to vector<8x1xf32>
    %4 = arith.divf %2, %3 : vector<8x1xf32>
    %5 = vector.broadcast %4 : vector<8x1xf32> to vector<8x256xf32>
    %6 = arith.subf %0, %5 : vector<8x256xf32>
    %7 = arith.mulf %6, %6 : vector<8x256xf32>
    %cst_2 = arith.constant dense<0.000000e+00> : vector<8xf32>
    %8 = vector.multi_reduction <add>, %7, %cst_2 [1] : vector<8x256xf32> to vector<8xf32>
    %9 = vector.shape_cast %8 : vector<8xf32> to vector<8x1xf32>
    %cst_3 = arith.constant 2.560000e+02 : f32
    %10 = vector.broadcast %cst_3 : f32 to vector<8x1xf32>
    %11 = arith.divf %9, %10 : vector<8x1xf32>
    %c0_4 = arith.constant 0 : index
    %c0_5 = arith.constant 0 : index
    %12 = vector.load %arg1[%c0_4, %c0_5] : memref<8x1xf32, #tpu.memory_space<vmem>>, vector<8x1xf32>
    %cst_6 = arith.constant 9.99999993E-9 : f32
    %13 = vector.broadcast %cst_6 : f32 to vector<8x1xf32>
    %14 = arith.addf %11, %13 : vector<8x1xf32>
    %15 = math.rsqrt %14 : vector<8x1xf32>
    %16 = arith.mulf %12, %15 : vector<8x1xf32>
    %c0_7 = arith.constant 0 : index
    %c0_8 = arith.constant 0 : index
    %17 = vector.load %arg2[%c0_7, %c0_8] : memref<8x1xf32, #tpu.memory_space<vmem>>, vector<8x1xf32>
    %18 = arith.mulf %4, %16 : vector<8x1xf32>
    %19 = arith.subf %17, %18 : vector<8x1xf32>
    %20 = vector.broadcast %16 : vector<8x1xf32> to vector<8x256xf32>
    %21 = arith.mulf %0, %20 : vector<8x256xf32>
    %22 = vector.broadcast %19 : vector<8x1xf32> to vector<8x256xf32>
    %23 = arith.addf %21, %22 : vector<8x256xf32>
    %c0_9 = arith.constant 0 : index
    %c0_10 = arith.constant 0 : index
    %24 = vector.load %arg4[%c0_9, %c0_10] : memref<8x256xf32, #tpu.memory_space<vmem>>, vector<8x256xf32>
    tpu.vector_store %arg4[%c0_9, %c0_10], %23 {strides = array<i32>} : memref<8x256xf32, #tpu.memory_space<vmem>>, vector<8x256xf32>,
    return
  }
  func.func @transform_0(%arg0: i32) -> (i32, i32) {
    %c0_i32 = arith.constant 0 : i32
    %c0_i32_0 = arith.constant 0 : i32
    return %arg0, %c0_i32 : i32, i32
  }
  func.func @transform_1(%arg0: i32) -> (i32, i32) {
    %c0_i32 = arith.constant 0 : i32
    %c0_i32_0 = arith.constant 0 : i32
    return %arg0, %c0_i32 : i32, i32
  }
  func.func @transform_2(%arg0: i32) -> (i32, i32) {
    %c0_i32 = arith.constant 0 : i32
    %c0_i32_0 = arith.constant 0 : i32
    return %arg0, %c0_i32 : i32, i32
  }
  func.func @transform_3(%arg0: i32) -> (i32, i32) {
    %c0_i32 = arith.constant 0 : i32
    %c0_i32_0 = arith.constant 0 : i32
    return %arg0, %c0_i32 : i32, i32
  }
}

</mosaic_0001>

<bundles_post_ra>
// kernel: apply_style.1
= control target key start
LH: loop header
LB: loop body
LE: loop exit
PB: predicated region body
PF: predicated region fallthrough
CT: control target
= control target key end

     0   :  { %v61_v10 = vmov 0   ;;  %s100_s2 = inlined_call_operand.vmem [shape: f32[8,256], index: 2, kind: input, shape index: {}]   ;;  %s101_s0 = inlined_call_operand.vmem [shape: f32[8,1], index: 0, kind: input, shape index: {}]   ;;  %s102_s1 = inlined_call_operand.vmem [shape: f32[8,1], index: 1, kind: input, shape index: {}]   ;;  %s103_s3 = inlined_call_operand.vmem [shape: f32[8,256], index: 3, kind: output, shape index: {}]  }
   0x1   :  { %v14_v0 = vld [vmem:[%s100_s2] sm:$0xff]  ;;  %v15_v1 = vld [vmem:[%s100_s2 + $0x8] sm:$0xff]  ;;  %57 = vset.pattern.permute.xlu1 %v61_v10  ;;  %58 = vset.pattern.permute.xlu0 %v61_v10 }
   0x2   :  { %v16_v2 = vadd.f32 %v15_v1, %v14_v0  ;;  %v29_v14 = vld [vmem:[%s101_s0] sm:$0xff] }
   0x3   :  { %v33_v17 = vld [vmem:[%s102_s1] sm:$0xff] }
   0x4   :  { %17 = vadd.xlane.f32.xlu0 %v16_v2 }
  0x8d   :  { %v18_v3 = vpop.xlane.xlu0 %17 }
  0x8e   :  { %v20_v4 = vmul.f32 0.00390625, %v18_v3 }
  0x90   :  { %v21_v5 = vsub.f32 %v14_v0, %v20_v4  ;;  %v22_v6 = vsub.f32 %v15_v1, %v20_v4 }
  0x92   :  { %v23_v7 = vmul.f32 %v21_v5, %v21_v5  ;;  %v24_v8 = vmul.f32 %v22_v6, %v22_v6 }
  0x94   :  { %v25_v9 = vadd.f32 %v24_v8, %v23_v7 }
  0x96   :  { %26 = vadd.xlane.f32.xlu0 %v25_v9 }
 0x11f   :  { %v27_v11 = vpop.xlane.xlu0 %26 }
 0x120   :  { %v28_v12 = vmul.f32 0.00390625, %v27_v11 }
 0x122   :  { %v30_v13 = vadd.f32 1e-08, %v28_v12 }
 0x124   :  { %59 = vrsqrt.f32 %v30_v13 }
 0x131   :  { %v60_v15 = vpop.eup %59 }
 0x132   :  { %v32_v16 = vmul.f32 %v60_v15, %v29_v14 }
 0x134   :  { %38 = vperm.xlu1 %57, %v32_v16   ;;  %v34_v18 = vmul.f32 %v32_v16, %v20_v4 }
 0x136   :  { %v35_v19 = vsub.f32 %v33_v17, %v34_v18 }
 0x138   :  { %45 = vperm.xlu1 %57, %v35_v19  }
 0x1af   :  { %v39_v20 = vpop.permute.xlu1 %38 }
 0x1b0   :  { %v41_v21 = vmul.f32 %v39_v20, %v14_v0  ;;  %v42_v22 = vmul.f32 %v39_v20, %v15_v1 }
 0x1b3   :  { %v46_v23 = vpop.permute.xlu1 %45 }
 0x1b4   :  { %v48_v24 = vadd.f32 %v46_v23, %v41_v21  ;;  %v49_v25 = vadd.f32 %v46_v23, %v42_v22 }
 0x1b6   :  { %50 = vst [vmem:[%s103_s3] sm:$0xff] %v48_v24  ;;  %51 = vst [vmem:[%s103_s3 + $0x8] sm:$0xff] %v49_v25 }

</bundles_post_ra>
